<compile_context>
chip_gen: v7x
topology: tpu7x:2x2x1
jax: 0.10.0
libtpu: 0.0.40
codegen_flags: <defaults>
</compile_context>

<pallas_src>
import functools

import jax
import jax.numpy as jnp
from jax.experimental import pallas as pl
from jax.experimental.pallas import tpu as pltpu

_LANE = 128


# ----------------------------------------------------------------------------
# Kernel (runs once; no grid; no scratch)
# ----------------------------------------------------------------------------
def _rnn_kernel(n_head, n_tail, batch, seq_len, *refs):
    """refs layout (weights pre-transposed to (in, out); biases (1, out)):

      x_ref (seq_len*batch, input_size)   -- time-major rows: row = t*batch + b
      [head_w, head_b] * n_head,
      rnn_w, rnn_b,
      [tail_w, tail_b] * n_tail,
      fc_w, fc_b,                         -- fc padded to 128 output lanes
      out_ref (seq_len*batch, 128)        -- lane-dense padded output slab
    """
    idx = 0
    x_ref = refs[idx]; idx += 1
    head = []
    for _ in range(n_head):
        head.append((refs[idx], refs[idx + 1])); idx += 2
    rnn_w_ref, rnn_b_ref = refs[idx], refs[idx + 1]; idx += 2
    tail = []
    for _ in range(n_tail):
        tail.append((refs[idx], refs[idx + 1])); idx += 2
    fc_w_ref, fc_b_ref = refs[idx], refs[idx + 1]; idx += 2
    out_ref = refs[idx]

    hidden = rnn_w_ref.shape[0]

    # --- head MLP hoisted out of the recurrence: one (seq*batch, .) chain ----
    z = x_ref[...]
    for w_ref, b_ref in head:
        z = jnp.maximum(
            jnp.dot(z, w_ref[...], preferred_element_type=jnp.float32) + b_ref[...],
            0.0)
    # Fold the RNN bias into z once instead of a per-step broadcast add.
    z = z + rnn_b_ref[...]
    # Keep z in registers; static-index it per timestep (no VMEM round trip).
    z3 = z.reshape(seq_len, batch, hidden)

    # --- sequential recurrence, fully register-resident --------------------
    rw = rnn_w_ref[...]                       # hoist weight into vregs once
    h = jnp.zeros((batch, hidden), jnp.float32)
    hs = []
    for t in range(seq_len):                  # small static trip count: fully
        h = jnp.maximum(                      # unrolled, static slices of z3
            jnp.dot(h, rw, preferred_element_type=jnp.float32) + z3[t],
            0.0)
        hs.append(h)
    y = jnp.concatenate(hs, axis=0)           # (seq_len*batch, hidden), in vregs

    # --- tail MLP + fc hoisted after the loop on the stacked hidden states ---
    for w_ref, b_ref in tail:
        y = jnp.maximum(
            jnp.dot(y, w_ref[...], preferred_element_type=jnp.float32) + b_ref[...],
            0.0)
    y = jnp.dot(y, fc_w_ref[...], preferred_element_type=jnp.float32) + fc_b_ref[...]

    # Single dense, lane-128 slab writeback (unmasked vst).
    out_ref[...] = y.astype(out_ref.dtype)


# ----------------------------------------------------------------------------
# Wrapper
# ----------------------------------------------------------------------------
def custom_relu_rnn_forward(x, params):
    """x: (batch, seq_len, input_size) float32 -> (batch, seq_len, output_size)."""
    batch, seq_len, input_size = x.shape
    hidden_size = params["rnn"][0].shape[0]
    output_size = params["fc"][0].shape[0]
    out_pad = ((output_size + _LANE - 1) // _LANE) * _LANE  # lane-dense output width

    # Time-major flat rows for the kernel: row = t*batch + b.  (Tiny glue op.)
    x2 = jnp.transpose(x, (1, 0, 2)).reshape(seq_len * batch, input_size)
    x2 = x2.astype(jnp.float32)

    # Weights pre-transposed to (in, out); biases (1, out).  Upper-triangular
    # mask applied once here (idempotent, equivalent to re-masking per step).
    def wt(w):
        return jnp.asarray(w, jnp.float32).T

    def bt(b):
        return jnp.asarray(b, jnp.float32).reshape(1, -1)

    flat_args = []
    for w, b in params["head"]:
        flat_args += [wt(w), bt(b)]
    rnn_w, rnn_b = params["rnn"]
    flat_args += [wt(jnp.triu(rnn_w)), bt(rnn_b)]
    for w, b in params["tail"]:
        flat_args += [wt(w), bt(b)]
    fc_w, fc_b = params["fc"]
    fc_wt = wt(fc_w)
    # Zero-pad fc to 128 output lanes so the kernel writeback is dense.
    fc_wp = jnp.zeros((fc_wt.shape[0], out_pad), jnp.float32).at[:, :output_size].set(fc_wt)
    fc_bp = jnp.zeros((1, out_pad), jnp.float32).at[:, :output_size].set(bt(fc_b))
    flat_args += [fc_wp, fc_bp]

    n_head = len(params["head"])
    n_tail = len(params["tail"])

    kernel = functools.partial(_rnn_kernel, n_head, n_tail, batch, seq_len)
    vmem_spec = pl.BlockSpec(memory_space=pltpu.MemorySpace.VMEM)

    out2 = pl.pallas_call(
        kernel,
        out_shape=jax.ShapeDtypeStruct((seq_len * batch, out_pad), jnp.float32),
        in_specs=[vmem_spec] * (1 + len(flat_args)),
        out_specs=vmem_spec,
    )(x2, *flat_args)

    # Slice the lane padding off and restore the PyTorch (batch, seq, out) layout.
    out2 = out2[:, :output_size]
    return jnp.transpose(out2.reshape(seq_len, batch, output_size), (1, 0, 2))


# ----------------------------------------------------------------------------
# Deterministic parameter init (shapes match CustomReLURNN.__init__)
# ----------------------------------------------------------------------------
def init_params(key, input_size, hidden_size, output_size, hidden_layers, output_layers):
    keys = iter(jax.random.split(key, 4 * (len(hidden_layers) + len(output_layers) + 4)))

    def linear(in_f, out_f, std=None):
        if std is None:
            std = (2.0 / in_f) ** 0.5          # CustomReLURNN.init_weights
        w = jax.random.normal(next(keys), (out_f, in_f), jnp.float32) * std
        bound = 1.0 / (in_f ** 0.5)            # PyTorch default bias init range
        b = jax.random.uniform(next(keys), (out_f,), jnp.float32, -bound, bound)
        return w, b

    head = []
    li = input_size
    for h in list(hidden_layers) + [hidden_size]:
        head.append(linear(li, h))
        li = h

    # rnn_cell.i2h: Linear(hidden, hidden), then upper-triangular mask
    rnn_w, rnn_b = linear(hidden_size, hidden_size, std=(1.0 / hidden_size) ** 0.5)
    rnn_w = jnp.triu(rnn_w)

    tail = []
    li = hidden_size
    for o in output_layers:
        tail.append(linear(li, o))
        li = o

    fc = linear(li, output_size)
    return {"head": head, "rnn": (rnn_w, rnn_b), "tail": tail, "fc": fc}


# ----------------------------------------------------------------------------
# Pure-JAX reference (mirrors the PyTorch forward) for a correctness check
# ----------------------------------------------------------------------------
def reference_forward(x, params):
    batch, seq_len, _ = x.shape
    hidden_size = params["rnn"][0].shape[0]
    h = jnp.zeros((batch, hidden_size), jnp.float32)
    outs = []
    for t in range(seq_len):
        z = x[:, t, :]
        for w, b in params["head"]:
            z = jnp.maximum(z @ w.T + b, 0.0)
        rw, rb = params["rnn"]
        h = jnp.maximum(h @ jnp.triu(rw).T + rb + z, 0.0)
        y = h
        for w, b in params["tail"]:
            y = jnp.maximum(y @ w.T + b, 0.0)
        fw, fb = params["fc"]
        outs.append((y @ fw.T + fb)[:, None, :])
    return jnp.concatenate(outs, axis=1)


# ----------------------------------------------------------------------------
if __name__ == "__main__":
    input_size = 8
    hidden_size = 32
    output_size = 4
    hidden_layers = [16]
    output_layers = [16]
    batch = 2
    seq_len = 8

    key = jax.random.PRNGKey(0)
    pkey, xkey = jax.random.split(key)
    params = init_params(pkey, input_size, hidden_size, output_size,
                         hidden_layers, output_layers)
    x = jax.random.normal(xkey, (batch, seq_len, input_size), jnp.float32)

    out = custom_relu_rnn_forward(x, params)
    out = jax.block_until_ready(out)

    ref = reference_forward(x, params)
    assert out.shape == (batch, seq_len, output_size)
    assert jnp.allclose(out, ref, atol=1e-4, rtol=1e-4), "mismatch vs reference"

    print("KERNEL_OK")
</pallas_src>

<mosaic_0001>
module attributes {stable_mosaic.version = 11 : i64} {
  func.func @_rnn_kernel(%arg0: memref<16x8xf32, #tpu.memory_space<vmem>>, %arg1: memref<8x16xf32, #tpu.memory_space<vmem>>, %arg2: memref<1x16xf32, #tpu.memory_space<vmem>>, %arg3: memref<16x32xf32, #tpu.memory_space<vmem>>, %arg4: memref<1x32xf32, #tpu.memory_space<vmem>>, %arg5: memref<32x32xf32, #tpu.memory_space<vmem>>, %arg6: memref<1x32xf32, #tpu.memory_space<vmem>>, %arg7: memref<32x16xf32, #tpu.memory_space<vmem>>, %arg8: memref<1x16xf32, #tpu.memory_space<vmem>>, %arg9: memref<16x128xf32, #tpu.memory_space<vmem>>, %arg10: memref<1x128xf32, #tpu.memory_space<vmem>>, %arg11: memref<16x128xf32, #tpu.memory_space<vmem>>) attributes {dimension_semantics = [], scalar_prefetch = 0 : i64, scratch_operands = 0 : i64, tpu.core_type = #tpu.core_type<tc>} {
    %c0 = arith.constant 0 : index
    %c0_0 = arith.constant 0 : index
    %0 = vector.load %arg0[%c0, %c0_0] : memref<16x8xf32, #tpu.memory_space<vmem>>, vector<16x8xf32>
    %c0_1 = arith.constant 0 : index
    %c0_2 = arith.constant 0 : index
    %1 = vector.load %arg1[%c0_1, %c0_2] : memref<8x16xf32, #tpu.memory_space<vmem>>, vector<8x16xf32>
    %cst = arith.constant dense<0.000000e+00> : vector<16x16xf32>
    %2 = tpu.matmul %0, %1, %cst {dimension_numbers = #tpu.dot_dimension_numbers<[1], [0], [0], [1], [0, 0, 1, 1], [], []>} : vector<16x8xf32>, vector<8x16xf32>, vector<16x16xf32> -> vector<16x16xf32>
    %c0_3 = arith.constant 0 : index
    %c0_4 = arith.constant 0 : index
    %3 = vector.load %arg2[%c0_3, %c0_4] : memref<1x16xf32, #tpu.memory_space<vmem>>, vector<1x16xf32>
    %4 = vector.broadcast %3 : vector<1x16xf32> to vector<16x16xf32>
    %5 = arith.addf %2, %4 : vector<16x16xf32>
    %cst_5 = arith.constant 0.000000e+00 : f32
    %6 = vector.broadcast %cst_5 : f32 to vector<16x16xf32>
    %7 = arith.maximumf %5, %6 : vector<16x16xf32>
    %c0_6 = arith.constant 0 : index
    %c0_7 = arith.constant 0 : index
    %8 = vector.load %arg3[%c0_6, %c0_7] : memref<16x32xf32, #tpu.memory_space<vmem>>, vector<16x32xf32>
    %cst_8 = arith.constant dense<0.000000e+00> : vector<16x32xf32>
    %9 = tpu.matmul %7, %8, %cst_8 {dimension_numbers = #tpu.dot_dimension_numbers<[1], [0], [0], [1], [0, 0, 1, 1], [], []>} : vector<16x16xf32>, vector<16x32xf32>, vector<16x32xf32> -> vector<16x32xf32>
    %c0_9 = arith.constant 0 : index
    %c0_10 = arith.constant 0 : index
    %10 = vector.load %arg4[%c0_9, %c0_10] : memref<1x32xf32, #tpu.memory_space<vmem>>, vector<1x32xf32>
    %11 = vector.broadcast %10 : vector<1x32xf32> to vector<16x32xf32>
    %12 = arith.addf %9, %11 : vector<16x32xf32>
    %cst_11 = arith.constant 0.000000e+00 : f32
    %13 = vector.broadcast %cst_11 : f32 to vector<16x32xf32>
    %14 = arith.maximumf %12, %13 : vector<16x32xf32>
    %c0_12 = arith.constant 0 : index
    %c0_13 = arith.constant 0 : index
    %15 = vector.load %arg6[%c0_12, %c0_13] : memref<1x32xf32, #tpu.memory_space<vmem>>, vector<1x32xf32>
    %16 = vector.broadcast %15 : vector<1x32xf32> to vector<16x32xf32>
    %17 = arith.addf %14, %16 : vector<16x32xf32>
    %18 = vector.shape_cast %17 : vector<16x32xf32> to vector<8x2x32xf32>
    %c0_14 = arith.constant 0 : index
    %c0_15 = arith.constant 0 : index
    %19 = vector.load %arg5[%c0_14, %c0_15] : memref<32x32xf32, #tpu.memory_space<vmem>>, vector<32x32xf32>
    %cst_16 = arith.constant 0.000000e+00 : f32
    %20 = vector.broadcast %cst_16 : f32 to vector<2x32xf32>
    %cst_17 = arith.constant dense<0.000000e+00> : vector<2x32xf32>
    %21 = tpu.matmul %20, %19, %cst_17 {dimension_numbers = #tpu.dot_dimension_numbers<[1], [0], [0], [1], [0, 0, 1, 1], [], []>} : vector<2x32xf32>, vector<32x32xf32>, vector<2x32xf32> -> vector<2x32xf32>
    %22 = vector.extract_strided_slice %18 {offsets = [0, 0, 0], sizes = [1, 2, 32], strides = [1, 1, 1]} : vector<8x2x32xf32> to vector<1x2x32xf32>
    %23 = vector.shape_cast %22 : vector<1x2x32xf32> to vector<2x32xf32>
    %24 = arith.addf %21, %23 : vector<2x32xf32>
    %cst_18 = arith.constant 0.000000e+00 : f32
    %25 = vector.broadcast %cst_18 : f32 to vector<2x32xf32>
    %26 = arith.maximumf %24, %25 : vector<2x32xf32>
    %cst_19 = arith.constant dense<0.000000e+00> : vector<2x32xf32>
    %27 = tpu.matmul %26, %19, %cst_19 {dimension_numbers = #tpu.dot_dimension_numbers<[1], [0], [0], [1], [0, 0, 1, 1], [], []>} : vector<2x32xf32>, vector<32x32xf32>, vector<2x32xf32> -> vector<2x32xf32>
    %28 = vector.extract_strided_slice %18 {offsets = [1, 0, 0], sizes = [1, 2, 32], strides = [1, 1, 1]} : vector<8x2x32xf32> to vector<1x2x32xf32>
    %29 = vector.shape_cast %28 : vector<1x2x32xf32> to vector<2x32xf32>
    %30 = arith.addf %27, %29 : vector<2x32xf32>
    %cst_20 = arith.constant 0.000000e+00 : f32
    %31 = vector.broadcast %cst_20 : f32 to vector<2x32xf32>
    %32 = arith.maximumf %30, %31 : vector<2x32xf32>
    %cst_21 = arith.constant dense<0.000000e+00> : vector<2x32xf32>
    %33 = tpu.matmul %32, %19, %cst_21 {dimension_numbers = #tpu.dot_dimension_numbers<[1], [0], [0], [1], [0, 0, 1, 1], [], []>} : vector<2x32xf32>, vector<32x32xf32>, vector<2x32xf32> -> vector<2x32xf32>
    %34 = vector.extract_strided_slice %18 {offsets = [2, 0, 0], sizes = [1, 2, 32], strides = [1, 1, 1]} : vector<8x2x32xf32> to vector<1x2x32xf32>
    %35 = vector.shape_cast %34 : vector<1x2x32xf32> to vector<2x32xf32>
    %36 = arith.addf %33, %35 : vector<2x32xf32>
    %cst_22 = arith.constant 0.000000e+00 : f32
    %37 = vector.broadcast %cst_22 : f32 to vector<2x32xf32>
    %38 = arith.maximumf %36, %37 : vector<2x32xf32>
    %cst_23 = arith.constant dense<0.000000e+00> : vector<2x32xf32>
    %39 = tpu.matmul %38, %19, %cst_23 {dimension_numbers = #tpu.dot_dimension_numbers<[1], [0], [0], [1], [0, 0, 1, 1], [], []>} : vector<2x32xf32>, vector<32x32xf32>, vector<2x32xf32> -> vector<2x32xf32>
    %40 = vector.extract_strided_slice %18 {offsets = [3, 0, 0], sizes = [1, 2, 32], strides = [1, 1, 1]} : vector<8x2x32xf32> to vector<1x2x32xf32>
    %41 = vector.shape_cast %40 : vector<1x2x32xf32> to vector<2x32xf32>
    %42 = arith.addf %39, %41 : vector<2x32xf32>
    %cst_24 = arith.constant 0.000000e+00 : f32
    %43 = vector.broadcast %cst_24 : f32 to vector<2x32xf32>
    %44 = arith.maximumf %42, %43 : vector<2x32xf32>
    %cst_25 = arith.constant dense<0.000000e+00> : vector<2x32xf32>
    %45 = tpu.matmul %44, %19, %cst_25 {dimension_numbers = #tpu.dot_dimension_numbers<[1], [0], [0], [1], [0, 0, 1, 1], [], []>} : vector<2x32xf32>, vector<32x32xf32>, vector<2x32xf32> -> vector<2x32xf32>
    %46 = vector.extract_strided_slice %18 {offsets = [4, 0, 0], sizes = [1, 2, 32], strides = [1, 1, 1]} : vector<8x2x32xf32> to vector<1x2x32xf32>
    %47 = vector.shape_cast %46 : vector<1x2x32xf32> to vector<2x32xf32>
    %48 = arith.addf %45, %47 : vector<2x32xf32>
    %cst_26 = arith.constant 0.000000e+00 : f32
    %49 = vector.broadcast %cst_26 : f32 to vector<2x32xf32>
    %50 = arith.maximumf %48, %49 : vector<2x32xf32>
    %cst_27 = arith.constant dense<0.000000e+00> : vector<2x32xf32>
    %51 = tpu.matmul %50, %19, %cst_27 {dimension_numbers = #tpu.dot_dimension_numbers<[1], [0], [0], [1], [0, 0, 1, 1], [], []>} : vector<2x32xf32>, vector<32x32xf32>, vector<2x32xf32> -> vector<2x32xf32>
    %52 = vector.extract_strided_slice %18 {offsets = [5, 0, 0], sizes = [1, 2, 32], strides = [1, 1, 1]} : vector<8x2x32xf32> to vector<1x2x32xf32>
    %53 = vector.shape_cast %52 : vector<1x2x32xf32> to vector<2x32xf32>
    %54 = arith.addf %51, %53 : vector<2x32xf32>
    %cst_28 = arith.constant 0.000000e+00 : f32
    %55 = vector.broadcast %cst_28 : f32 to vector<2x32xf32>
    %56 = arith.maximumf %54, %55 : vector<2x32xf32>
    %cst_29 = arith.constant dense<0.000000e+00> : vector<2x32xf32>
    %57 = tpu.matmul %56, %19, %cst_29 {dimension_numbers = #tpu.dot_dimension_numbers<[1], [0], [0], [1], [0, 0, 1, 1], [], []>} : vector<2x32xf32>, vector<32x32xf32>, vector<2x32xf32> -> vector<2x32xf32>
    %58 = vector.extract_strided_slice %18 {offsets = [6, 0, 0], sizes = [1, 2, 32], strides = [1, 1, 1]} : vector<8x2x32xf32> to vector<1x2x32xf32>
    %59 = vector.shape_cast %58 : vector<1x2x32xf32> to vector<2x32xf32>
    %60 = arith.addf %57, %59 : vector<2x32xf32>
    %cst_30 = arith.constant 0.000000e+00 : f32
    %61 = vector.broadcast %cst_30 : f32 to vector<2x32xf32>
    %62 = arith.maximumf %60, %61 : vector<2x32xf32>
    %cst_31 = arith.constant dense<0.000000e+00> : vector<2x32xf32>
    %63 = tpu.matmul %62, %19, %cst_31 {dimension_numbers = #tpu.dot_dimension_numbers<[1], [0], [0], [1], [0, 0, 1, 1], [], []>} : vector<2x32xf32>, vector<32x32xf32>, vector<2x32xf32> -> vector<2x32xf32>
    %64 = vector.extract_strided_slice %18 {offsets = [7, 0, 0], sizes = [1, 2, 32], strides = [1, 1, 1]} : vector<8x2x32xf32> to vector<1x2x32xf32>
    %65 = vector.shape_cast %64 : vector<1x2x32xf32> to vector<2x32xf32>
    %66 = arith.addf %63, %65 : vector<2x32xf32>
    %cst_32 = arith.constant 0.000000e+00 : f32
    %67 = vector.broadcast %cst_32 : f32 to vector<2x32xf32>
    %68 = arith.maximumf %66, %67 : vector<2x32xf32>
    %69 = tpu.concatenate %26, %32, %38, %44, %50, %56, %62, %68 in 0 : vector<2x32xf32>, vector<2x32xf32>, vector<2x32xf32>, vector<2x32xf32>, vector<2x32xf32>, vector<2x32xf32>, vector<2x32xf32>, vector<2x32xf32> -> vector<16x32xf32>
    %c0_33 = arith.constant 0 : index
    %c0_34 = arith.constant 0 : index
    %70 = vector.load %arg7[%c0_33, %c0_34] : memref<32x16xf32, #tpu.memory_space<vmem>>, vector<32x16xf32>
    %cst_35 = arith.constant dense<0.000000e+00> : vector<16x16xf32>
    %71 = tpu.matmul %69, %70, %cst_35 {dimension_numbers = #tpu.dot_dimension_numbers<[1], [0], [0], [1], [0, 0, 1, 1], [], []>} : vector<16x32xf32>, vector<32x16xf32>, vector<16x16xf32> -> vector<16x16xf32>
    %c0_36 = arith.constant 0 : index
    %c0_37 = arith.constant 0 : index
    %72 = vector.load %arg8[%c0_36, %c0_37] : memref<1x16xf32, #tpu.memory_space<vmem>>, vector<1x16xf32>
    %73 = vector.broadcast %72 : vector<1x16xf32> to vector<16x16xf32>
    %74 = arith.addf %71, %73 : vector<16x16xf32>
    %cst_38 = arith.constant 0.000000e+00 : f32
    %75 = vector.broadcast %cst_38 : f32 to vector<16x16xf32>
    %76 = arith.maximumf %74, %75 : vector<16x16xf32>
    %c0_39 = arith.constant 0 : index
    %c0_40 = arith.constant 0 : index
    %77 = vector.load %arg9[%c0_39, %c0_40] : memref<16x128xf32, #tpu.memory_space<vmem>>, vector<16x128xf32>
    %cst_41 = arith.constant dense<0.000000e+00> : vector<16x128xf32>
    %78 = tpu.matmul %76, %77, %cst_41 {dimension_numbers = #tpu.dot_dimension_numbers<[1], [0], [0], [1], [0, 0, 1, 1], [], []>} : vector<16x16xf32>, vector<16x128xf32>, vector<16x128xf32> -> vector<16x128xf32>
    %c0_42 = arith.constant 0 : index
    %c0_43 = arith.constant 0 : index
    %79 = vector.load %arg10[%c0_42, %c0_43] : memref<1x128xf32, #tpu.memory_space<vmem>>, vector<1x128xf32>
    %80 = vector.broadcast %79 : vector<1x128xf32> to vector<16x128xf32>
    %81 = arith.addf %78, %80 : vector<16x128xf32>
    %c0_44 = arith.constant 0 : index
    %c0_45 = arith.constant 0 : index
    %82 = vector.load %arg11[%c0_44, %c0_45] : memref<16x128xf32, #tpu.memory_space<vmem>>, vector<16x128xf32>
    tpu.vector_store %arg11[%c0_44, %c0_45], %81 {strides = array<i32>} : memref<16x128xf32, #tpu.memory_space<vmem>>, vector<16x128xf32>,
    return
  }
}

</mosaic_0001>

<bundles_post_ra>
// kernel: tpu_custom_call.1
= control target key start
LH: loop header
LB: loop body
LE: loop exit
PB: predicated region body
PF: predicated region fallthrough
CT: control target
= control target key end

     0   :  { %16 = vsyncpa [#allocation3], 0  ;;  %s1659_s0 = inlined_call_operand.vmem [shape: f32[16,8], index: 0, kind: input, shape index: {}]   ;;  %s1660_s1 = inlined_call_operand.hbm [shape: f32[8,16], index: 1, kind: input, shape index: {}]   ;;  %s1661_s2 = inlined_call_operand.vmem [shape: f32[1,16], index: 2, kind: input, shape index: {}]   ;;  %s1662_s3 = inlined_call_operand.vmem [shape: f32[16,32], index: 3, kind: input, shape index: {}]   ;;  %s1663_s4 = inlined_call_operand.vmem [shape: f32[1,32], index: 4, kind: input, shape index: {}]   ;;  %s1664_s5 = inlined_call_operand.vmem [shape: f32[32,32], index: 5, kind: input, shape index: {}]   ;;  %s1665_s6 = inlined_call_operand.vmem [shape: f32[1,32], index: 6, kind: input, shape index: {}]   ;;  %s1666_s7 = inlined_call_operand.vmem [shape: f32[32,16], index: 7, kind: input, shape index: {}]   ;;  %s1667_s8 = inlined_call_operand.vmem [shape: f32[1,16], index: 8, kind: input, shape index: {}]   ;;  %s1668_s9 = inlined_call_operand.vmem [shape: f32[16,128], index: 9, kind: input, shape index: {}]   ;;  %s1669_s10 = inlined_call_operand.vmem [shape: f32[1,128], index: 10, kind: input, shape index: {}]   ;;  %s1670_s11 = inlined_call_operand.hbm [shape: f32[16,128], index: 11, kind: output, shape index: {}]  }
   0x1   :  { %17 = vsyncpa [#allocation4], 0  ;;  %s1428_s17 = smov [#allocation2]   ;;  %s1380_s21 = scalar_lea.hbm %s1660_s1, 128 }
   0x2   :  { %s26_s18 = sshll.u32 %s1428_s17, 4  ;;  %p1381_p0 = scmp.ne.s32.totalorder %s1660_s1, %s1380_s21  ;;  %s27_s18 = int_to_ptr.vmem [resolvable:$true] %s26_s18 }
   0x3   :  { %p1384_p1 = scmp.lt.u32.totalorder %s1380_s21, %s1660_s1 }
   0x5   :  { %p1386_p2 = pnand %p1384_p1, %p1381_p0 }
   0x7   :  { %1389 = shalt.err (!%p1386_p2)
}
   0x8   :  { %s1390_s26 = scalar_lea.vmem %s27_s18, 128  ;;  %p1395_p4 = scmp.lt.s32.totalorder %s27_s18, %s27_s18 }
   0x9   :  { %p1391_p3 = scmp.ne.s32.totalorder %s27_s18, %s1390_s26  ;;  %p1396_p5 = scmp.lt.s32.totalorder %s1390_s26, %s1390_s26 }
   0xb   :  { %p1397_p6 = por %p1396_p5, %p1395_p4 }
   0xd   :  { %p1398_p7 = pnand %p1397_p6, %p1391_p3 }
   0xf   :  { %1401 = shalt.err (!%p1398_p7)
}
  0x10   :  { %29 = dma.hbm_to_vmem [thread:$0]  %s1660_s1, 128, %s27_s18, [#allocation3]  }
  0x11   :  { %1424 = dma.done.wait [#allocation3], 128  }
  0x12   :  { %1425 = vsyncadd [#allocation3], 4294967168  ;;  %vm61_vm0 = vcmask 64512   ;;  %v53_v0 = vld [vmem:[#allocation2] sm:$0xff]  ;;  %v52_v2 = vld [vmem:[%s1659_s0 + $0x8] sm:$0xff]  ;;  %v1429_v9 = vmov 0.0|0.0   ;;  %v253_v25 = vlaneseq }
  0x13   :  { %v51_v1 = vld [vmem:[%s1659_s0] sm:$0xff]  ;;  %1190 = vmatprep.subr.mxu0 %v53_v0  ;;  %v146_v4 = vld [vmem:[%s1662_s3 + $0x8] sm:$0xff]  ;;  %v293_v10 = vld [vmem:[%s1664_s5 + $0x10] sm:$0xff]  ;;  %vm1430_vm1 = vmmov 0   ;;  %v1431_v13 = vmov 0.0   ;;  %vm154_vm2 = vcmask 130048  }
  0x14   :  { %1192 = vmatprep.mubr.msk.f32.mxu0 %vm61_vm0, %v51_v1  ;;  %1191 = vmatpush3.msra.mxu0 %v53_v0  ;;  %v145_v3 = vld [vmem:[%s1662_s3] sm:$0xff]  ;;  %v292_v7 = vld [vmem:[%s1664_s5 + $0x8] sm:$0xff]  ;;  %v294_v11 = vld [vmem:[%s1664_s5 + $0x18] sm:$0xff]  ;;  %v1432_v23 = vmov 1983009808   ;;  %v254_v28 = vshrl.u32 %v253_v25, 7 }
  0x15   :  { %1193 = vmatmul.mubr.msk.f32.vlgmr.msra.gmra.mrb[0].mxu0 %vm61_vm0, %v52_v2  ;;  %v1308_v5 = vpack.c.bf16 %v146_v4, %v145_v3  ;;  %v291_v6 = vld [vmem:[%s1664_s5] sm:$0xff]  ;;  %1312 = vmatprep.subr.bf16.mxu0 %v1429_v9  ;;  %v1537_v12 = vpack.c.bf16 %v294_v11, %v293_v10  ;;  %v251_v24 = vunpack.c.l.s4 %v1432_v23  ;;  %vm295_vm3 = vcmask 261120   ;;  %v912_v23 = vld [vmem:[%s1666_s7 + $0x10] sm:$0xff] }
  0x16   :  { %v1526_v8 = vpack.c.bf16 %v292_v7, %v291_v6  ;;  %1210 = vmatprep.mubr.msk.f32.mxu0 %vm1430_vm1, %v1431_v13  ;;  %v1113_v14 = vld [vmem:[%s1661_s2] ss:$0 sm:$0xff]  ;;  %vm901_vm4 = vcmask 1041408   ;;  %vm903_vm5 = vcmask 1043456   ;;  %vm905_vm6 = vcmask 1045504  }
  0x17   :  { %1309 = vmatprep.subr.bf16.mxu1 %v1308_v5  ;;  %v1116_v26 = vld [vmem:[%s1663_s4] ss:$0 sm:$0xff]  ;;  %v252_v27 = vunpack.c.0.s8 %v251_v24  ;;  %v913_v24 = vld [vmem:[%s1666_s7 + $0x18] sm:$0xff] }
  0x18   :  { %1311 = vmatpush3.bf16.msra.mxu1 %v1308_v5  ;;  %1314 = vmatpush3.bf16.msra.mxu0 %v1526_v8  ;;  %v1119_v32 = vld [vmem:[%s1665_s6] ss:$0 sm:$0xff]  ;;  %v1364_v25 = vpack.c.bf16 %v913_v24, %v912_v23 }
  0x19   :  { %1318 = vmatprep.subr.bf16.mxu1 %v1429_v9  ;;  %1315 = vmatprep.subr.bf16.mxu0 %v1429_v9  ;;  %v255_v35 = vsub.s32 %v252_v27, %v254_v28 }
  0x1c   :  { %1317 = vmatpush3.bf16.msra.mxu0 %v1537_v12 }
  0x1d   :  { %1324 = vmatprep.subr.bf16.mxu0 %v1429_v9 }
  0x1f   :  { %1211 = vmatmul.mubr.f32.vlgmr.msra.gmra.mrb[2].mxu0 %v1431_v13 }
  0x20   :  { %1326 = vmatpush3.bf16.msra.mxu0 %v1526_v8  ;;  %1232 = vmatprep.mubr.msk.f32.mxu0 %vm1430_vm1, %v1431_v13 }
  0x21   :  { %1327 = vmatprep.subr.bf16.mxu0 %v1429_v9 }
  0x24   :  { %1329 = vmatpush3.bf16.msra.mxu0 %v1537_v12 }
  0x25   :  { %1336 = vmatprep.subr.bf16.mxu0 %v1429_v9 }
  0xe8   :  { %v1194_v15 = vpop.f32.mrb[0].mxu0 }
  0xe9   :  { %v140_v16 = vadd.f32 %v1194_v15, %v1113_v14  ;;  %v134_v17 = vpop.f32.mrb[1].mxu0 }
  0xea   :  { %v135_v18 = vadd.f32 %v1113_v14, %v134_v17 }
  0xeb   :  { %v144_v20 = vmax.f32 %v140_v16, 0.0 }
  0xec   :  { %v143_v19 = vmax.f32 %v135_v18, 0.0 }
  0xee   :  { %1199 = vmatprep.mubr.msk.f32.mxu1 %vm154_vm2, %v143_v19 }
  0xef   :  { %1200 = vmatmul.mubr.msk.f32.vlgmr.msra.gmra.mrb[0].mxu1 %vm154_vm2, %v144_v20  ;;  %v910_v20 = vld [vmem:[%s1666_s7] sm:$0xff] }
  0xf0   :  { %1320 = vmatpush3.bf16.msra.mxu1 %v1526_v8  ;;  %1221 = vmatprep.mubr.msk.f32.mxu1 %vm1430_vm1, %v1431_v13 }
  0xf1   :  { %1321 = vmatprep.subr.bf16.mxu1 %v1429_v9 }
  0xf2   :  { %v365_v21 = vpop.f32.mrb[2].mxu0 }
  0xf3   :  { %v1212_v22 = vpop.f32.mrb[3].mxu0 }
  0xf4   :  { %1323 = vmatpush3.bf16.msra.mxu1 %v1537_v12 }
  0xf5   :  { %1330 = vmatprep.subr.bf16.mxu1 %v1429_v9 }
 0x1c2   :  { %v1201_v29 = vpop.f32.mrb[0].mxu1 }
 0x1c3   :  { %v233_v30 = vadd.f32 %v1201_v29, %v1116_v26  ;;  %v227_v31 = vpop.f32.mrb[1].mxu1 }
 0x1c4   :  { %v228_v33 = vadd.f32 %v1116_v26, %v227_v31 }
 0x1c5   :  { %v237_v34 = vmax.f32 %v233_v30, 0.0 }
 0x1c6   :  { %v236_v36 = vmax.f32 %v228_v33, 0.0  ;;  %v1004_v33 = vld [vmem:[%s1668_s9] sm:$0xff] }
 0x1c7   :  { %v246_v37 = vadd.f32 %v1119_v32, %v237_v34  ;;  %v1005_v34 = vld [vmem:[%s1668_s9 + $0x8] sm:$0xff]  ;;  %s1433_s9 = smov [#allocation5]  }
 0x1c8   :  { %v245_v38 = vadd.f32 %v1119_v32, %v236_v36  ;;  %v1127_v36 = vld [vmem:[%s1667_s8] ss:$0 sm:$0xff]  ;;  %s1101_s19 = sshll.u32 %s1433_s9, 4  ;;  %s1102_s19 = int_to_ptr.vmem [resolvable:$true] %s1101_s19 }
 0x1c9   :  { %v1568_v39 = vrot.slane %v246_v37, %v255_v35  ;;  %v266_v40 = vcombine.high %v246_v37, %v246_v37  ;;  %s1402_s8 = scalar_lea.vmem %s1102_s19, 256  ;;  %p1407_p9 = scmp.lt.s32.totalorder %s1102_s19, %s1102_s19 }
 0x1ca   :  { %v256_v41 = vrot.slane %v245_v38, %v255_v35  ;;  %v249_v42 = vcombine.high %v245_v38, %v245_v38  ;;  %p1403_p8 = scmp.ne.s32.totalorder %s1102_s19, %s1402_s8  ;;  %p1408_p10 = scmp.lt.s32.totalorder %s1402_s8, %s1402_s8 }
 0x1cb   :  { %v1570_v43 = vrot.slane %v266_v40, %v255_v35  ;;  %v281_v7 = vcombine.high %v1568_v39, %v1568_v39 }
 0x1cc   :  { %v366_v44 = vadd.f32 %v365_v21, %v256_v41  ;;  %v263_v45 = vrot.slane %v249_v42, %v255_v35  ;;  %v264_v47 = vcombine.high %v256_v41, %v256_v41  ;;  %v911_v21 = vld [vmem:[%s1666_s7 + $0x8] sm:$0xff]  ;;  %v1368_v35 = vpack.c.bf16 %v1005_v34, %v1004_v33  ;;  %p1409_p11 = por %p1408_p10, %p1407_p9 }
 0x1cd   :  { %v1360_v22 = vpack.c.bf16 %v911_v21, %v910_v20  ;;  %v282_v26 = vcombine.high %v1570_v43, %v1570_v43 }
 0x1ce   :  { %v369_v46 = vmax.f32 %v366_v44, 0.0  ;;  %v265_v60 = vcombine.high %v263_v45, %v263_v45  ;;  %p1410_p12 = pnand %p1409_p11, %p1403_p8 }
 0x1d0   :  { %1222 = vmatmul.mubr.msk.f32.vlgmr.msra.gmra.mrb[2].mxu1 %vm295_vm3, %v369_v46 }
 0x1d1   :  { %1332 = vmatpush3.bf16.msra.mxu1 %v1526_v8  ;;  %1243 = vmatprep.mubr.msk.f32.mxu1 %vm1430_vm1, %v1431_v13 }
 0x1d2   :  { %1333 = vmatprep.subr.bf16.mxu1 %v1429_v9 }
 0x1d5   :  { %1335 = vmatpush3.bf16.msra.mxu1 %v1537_v12 }
 0x1d6   :  { %1342 = vmatprep.subr.bf16.mxu1 %v1429_v9 }
 0x2a3   :  { %v439_v48 = vpop.f32.mrb[2].mxu1 }
 0x2a4   :  { %v440_v49 = vadd.f32 %v439_v48, %v264_v47  ;;  %v1223_v50 = vpop.f32.mrb[3].mxu1 }
 0x2a6   :  { %v443_v51 = vmax.f32 %v440_v49, 0.0 }
 0x2a8   :  { %1233 = vmatmul.mubr.msk.f32.vlgmr.msra.gmra.mrb[4].mxu0 %vm295_vm3, %v443_v51  ;;  %v888_v55 = vrot.slane %v443_v51, 6 }
 0x2a9   :  { %1338 = vmatpush3.bf16.msra.mxu0 %v1526_v8  ;;  %1254 = vmatprep.mubr.msk.f32.mxu0 %vm1430_vm1, %v1431_v13 }
 0x2aa   :  { %1339 = vmatprep.subr.bf16.mxu0 %v1429_v9  ;;  %v902_v58 = vsel %vm901_vm4, %v369_v46, %v888_v55 }
 0x2ad   :  { %1341 = vmatpush3.bf16.msra.mxu0 %v1537_v12 }
 0x2ae   :  { %1348 = vmatprep.subr.bf16.mxu0 %v1429_v9 }
 0x37b   :  { %v513_v52 = vpop.f32.mrb[4].mxu0 }
 0x37c   :  { %v514_v53 = vadd.f32 %v513_v52, %v263_v45  ;;  %v1234_v54 = vpop.f32.mrb[5].mxu0 }
 0x37e   :  { %v517_v56 = vmax.f32 %v514_v53, 0.0 }
 0x380   :  { %v890_v57 = vrot.slane %v517_v56, 4  ;;  %1244 = vmatmul.mubr.msk.f32.vlgmr.msra.gmra.mrb[4].mxu1 %vm295_vm3, %v517_v56 }
 0x381   :  { %1344 = vmatpush3.bf16.msra.mxu1 %v1526_v8  ;;  %1265 = vmatprep.mubr.msk.f32.mxu1 %vm1430_vm1, %v1431_v13 }
 0x382   :  { %1345 = vmatprep.subr.bf16.mxu1 %v1429_v9  ;;  %v904_v59 = vsel %vm903_vm5, %v902_v58, %v890_v57 }
 0x385   :  { %1347 = vmatpush3.bf16.msra.mxu1 %v1537_v12 }
 0x386   :  { %1354 = vmatprep.subr.bf16.mxu1 %v1429_v9 }
 0x453   :  { %v587_v61 = vpop.f32.mrb[4].mxu1 }
 0x454   :  { %v588_v62 = vadd.f32 %v587_v61, %v265_v60  ;;  %v1245_v63 = vpop.f32.mrb[5].mxu1 }
 0x456   :  { %v591_v0 = vmax.f32 %v588_v62, 0.0 }
 0x458   :  { %v892_v1 = vrot.slane %v591_v0, 2  ;;  %1255 = vmatmul.mubr.msk.f32.vlgmr.msra.gmra.mrb[6].mxu0 %vm295_vm3, %v591_v0 }
 0x459   :  { %1350 = vmatpush3.bf16.msra.mxu0 %v1526_v8  ;;  %1276 = vmatprep.mubr.msk.f32.mxu0 %vm1430_vm1, %v1431_v13 }
 0x45a   :  { %1351 = vmatprep.subr.bf16.mxu0 %v1429_v9  ;;  %v906_v2 = vsel %vm905_vm6, %v904_v59, %v892_v1 }
 0x45d   :  { %1353 = vmatpush3.bf16.msra.mxu0 %v1537_v12 }
 0x45e   :  { %1361 = vmatprep.subr.bf16.mxu0 %v1360_v22 }
 0x52b   :  { %v661_v3 = vpop.f32.mrb[6].mxu0 }
 0x52c   :  { %v662_v4 = vadd.f32 %v661_v3, %v1568_v39  ;;  %v1256_v5 = vpop.f32.mrb[7].mxu0 }
 0x52e   :  { %v665_v6 = vmax.f32 %v662_v4, 0.0 }
 0x530   :  { %1266 = vmatmul.mubr.msk.f32.vlgmr.msra.gmra.mrb[6].mxu1 %vm295_vm3, %v665_v6 }
 0x531   :  { %1356 = vmatpush3.bf16.msra.mxu1 %v1526_v8  ;;  %1287 = vmatprep.mubr.msk.f32.mxu1 %vm1430_vm1, %v1431_v13 }
 0x532   :  { %1357 = vmatprep.subr.bf16.mxu1 %v1429_v9 }
 0x535   :  { %1359 = vmatpush3.bf16.msra.mxu1 %v1537_v12 }
 0x536   :  { %1369 = vmatprep.subr.bf16.mxu1 %v1368_v35 }
 0x603   :  { %v735_v10 = vpop.f32.mrb[6].mxu1 }
 0x604   :  { %v736_v11 = vadd.f32 %v735_v10, %v281_v7  ;;  %v1267_v14 = vpop.f32.mrb[7].mxu1 }
 0x606   :  { %v739_v15 = vmax.f32 %v736_v11, 0.0 }
 0x608   :  { %1277 = vmatmul.mubr.msk.f32.vlgmr.msra.gmra.mrb[8].mxu0 %vm295_vm3, %v739_v15  ;;  %v894_v13 = vrot.slane %v739_v15, 6 }
 0x609   :  { %1298 = vmatprep.mubr.msk.f32.mxu0 %vm295_vm3, %v906_v2  ;;  %1363 = vmatpush3.bf16.msra.mxu0 %v1360_v22 }
 0x60a   :  { %v907_v12 = vsel %vm901_vm4, %v665_v6, %v894_v13  ;;  %1365 = vmatprep.subr.bf16.mxu0 %v1364_v25 }
 0x60d   :  { %1367 = vmatpush3.bf16.msra.mxu0 %v1364_v25 }
 0x6db   :  { %v809_v16 = vpop.f32.mrb[8].mxu0 }
 0x6dc   :  { %v810_v8 = vadd.f32 %v809_v16, %v1570_v43  ;;  %v1278_v17 = vpop.f32.mrb[9].mxu0  ;;  %v1130_v43 = vld [vmem:[%s1669_s10] ss:$0 sm:$0xff] }
 0x6de   :  { %v813_v18 = vmax.f32 %v810_v8, 0.0 }
 0x6e0   :  { %v896_v9 = vrot.slane %v813_v18, 4  ;;  %1288 = vmatmul.mubr.msk.f32.vlgmr.msra.gmra.mrb[8].mxu1 %vm295_vm3, %v813_v18 }
 0x6e1   :  { %1371 = vmatpush3.bf16.msra.mxu1 %v1368_v35 }
 0x6e2   :  { %v908_v19 = vsel %vm903_vm5, %v907_v12, %v896_v9 }
 0x7b3   :  { %v883_v27 = vpop.f32.mrb[8].mxu1 }
 0x7b4   :  { %v884_v28 = vadd.f32 %v883_v27, %v282_v26  ;;  %v1289_v29 = vpop.f32.mrb[9].mxu1 }
 0x7b6   :  { %v887_v30 = vmax.f32 %v884_v28, 0.0 }
 0x7b8   :  { %v899_v31 = vrot.slane %v887_v30, 2 }
 0x7ba   :  { %v909_v32 = vsel %vm905_vm6, %v908_v19, %v899_v31 }
 0x7bb   :  { %1299 = vmatmul.mubr.msk.f32.vlgmr.msra.gmra.mrb[10].mxu0 %vm295_vm3, %v909_v32 }
 0x88e   :  { %v1300_v37 = vpop.f32.mrb[10].mxu0 }
 0x88f   :  { %v999_v38 = vadd.f32 %v1300_v37, %v1127_v36  ;;  %v993_v39 = vpop.f32.mrb[11].mxu0 }
 0x890   :  { %v994_v40 = vadd.f32 %v1127_v36, %v993_v39 }
 0x891   :  { %v1003_v42 = vmax.f32 %v999_v38, 0.0 }
 0x892   :  { %v1002_v41 = vmax.f32 %v994_v40, 0.0 }
 0x894   :  { %1305 = vmatprep.mubr.msk.f32.mxu1 %vm154_vm2, %v1002_v41 }
 0x895   :  { %1306 = vmatmul.mubr.msk.f32.vlgmr.msra.gmra.mrb[10].mxu1 %vm154_vm2, %v1003_v42 }
 0x968   :  { %v1307_v44 = vpop.f32.mrb[10].mxu1 }
 0x969   :  { %v1091_v45 = vadd.f32 %v1307_v44, %v1130_v43  ;;  %v1085_v46 = vpop.f32.mrb[11].mxu1 }
 0x96a   :  { %v1086_v47 = vadd.f32 %v1130_v43, %v1085_v46 }
 0x96b   :  { %1095 = vst [vmem:[#allocation5 + $0x8] sm:$0xff] %v1091_v45 }
 0x96c   :  { %1094 = vst [vmem:[#allocation5] sm:$0xff] %v1086_v47 }
 0x96d   :  { %1413 = shalt.err (!%p1410_p12)
}
 0x96e   :  { %s1414_s10 = scalar_lea.hbm %s1670_s11, 256 }
 0x96f   :  { %p1415_p13 = scmp.ne.s32.totalorder %s1670_s11, %s1414_s10  ;;  %p1418_p0 = scmp.lt.u32.totalorder %s1414_s10, %s1670_s11 }
 0x971   :  { %p1420_p1 = pnand %p1418_p0, %p1415_p13 }
 0x973   :  { %1423 = shalt.err (!%p1420_p1)
}
 0x974   :  { %s1434_s2 = smov 128   ;;  %s1435_s24 = smov 8  }
 0x975   :  { %1107 = dma.vmem_to_hbm [thread:$0]  %s1102_s19, 256, %s1670_s11, [#allocation4], %s1434_s2, %s1434_s2, %s1435_s24  }
 0x976   :  { %1426 = dma.done.wait [#allocation4], 256  }
 0x977   :  { %1427 = vsyncadd [#allocation4], 4294967040 }
 0x978   :  { %1111 = vsyncpa [#allocation3], 1 }
 0x979   :  { %1112 = vsyncpa [#allocation4], 1 }

</bundles_post_ra>
